<compile_context>
chip_gen: v7x
topology: tpu7x:2x2x1
jax: 0.10.0
libtpu: 0.0.40
codegen_flags: <defaults>
</compile_context>

<pallas_src>
import jax
import jax.numpy as jnp
from jax import lax
from jax.experimental import pallas as pl
from jax.experimental.pallas import tpu as pltpu  # noqa: F401

# Small, module-consistent shapes.
L, N, E = 8, 2, 32           # seq len, batch, x_dim (embed dim)
H = 8                        # num_heads
DH = E // H                  # per-head dim (4)
CH = 64                      # ch_dim (FFN hidden)
EPS = 1e-5                   # nn.LayerNorm default eps
SCALE = 1.0 / float(DH) ** 0.5

NE = N * E                   # flattened (batch, embed) lane width      = 64
CH2 = N * CH                 # flattened (batch, ffn-hidden) lane width = 128
NH = N * H                   # number of (batch, head) pairs            = 16
NHL = NH * L                 # stacked attention rows                   = 128

assert L & (L - 1) == 0 and DH & (DH - 1) == 0   # shift/mask tricks below
LOG2_L = L.bit_length() - 1
LOG2_DH = DH.bit_length() - 1

# ---- row offsets inside the packed parameter slabs (all 8-aligned) ----
R_WQ, R_WK, R_WV, R_WO = 0, NE, 2 * NE, 3 * NE   # block-diag (NE, NE) each
R_W2 = 4 * NE                                    # block-diag (CH2, NE)
_V0 = 4 * NE + CH2
(R_BQ, R_BK, R_BV, R_BO, R_B2,
 R_G1, R_BE1, R_G2, R_BE2) = (_V0 + 8 * i for i in range(9))
W64_ROWS = _V0 + 8 * 9                           # 456
R_W1, R_B1 = 0, NE                               # rows in the 128-lane slab
W128_ROWS = NE + 8                               # 72


def transformer_block_kernel(x_ref, w64_ref, w128_ref, out_ref):
    f32 = jnp.float32
    x = x_ref[...]                                           # (L, NE)

    # ---- parameter views (static, sublane-aligned ref slices) ----
    wq = w64_ref[R_WQ:R_WQ + NE, :]                          # (NE, NE)
    wk = w64_ref[R_WK:R_WK + NE, :]
    wv = w64_ref[R_WV:R_WV + NE, :]
    wo = w64_ref[R_WO:R_WO + NE, :]
    w2 = w64_ref[R_W2:R_W2 + CH2, :]                         # (CH2, NE)
    bq = w64_ref[R_BQ:R_BQ + 1, :]                           # (1, NE)
    bk = w64_ref[R_BK:R_BK + 1, :]
    bv = w64_ref[R_BV:R_BV + 1, :]
    bo = w64_ref[R_BO:R_BO + 1, :]
    b2 = w64_ref[R_B2:R_B2 + 1, :]
    g1 = w64_ref[R_G1:R_G1 + 1, :]
    be1 = w64_ref[R_BE1:R_BE1 + 1, :]
    g2 = w64_ref[R_G2:R_G2 + 1, :]
    be2 = w64_ref[R_BE2:R_BE2 + 1, :]
    w1 = w128_ref[R_W1:R_W1 + NE, :]                         # (NE, CH2)
    b1 = w128_ref[R_B1:R_B1 + 1, :]                          # (1, CH2)

    # ---- selector / block masks (2-D iota + shifts only, all 2-D values) ----
    # attention is stacked over rows r = b*L + l, with b = (batch, head) pair.
    r2 = lax.broadcasted_iota(jnp.int32, (NHL, NE), 0)
    c2 = lax.broadcasted_iota(jnp.int32, (NHL, NE), 1)
    blkmask = jnp.where((r2 >> LOG2_L) == (c2 >> LOG2_DH), 1.0, 0.0)  # (NHL, NE)

    rt = lax.broadcasted_iota(jnp.int32, (NHL, L), 0)
    lt = lax.broadcasted_iota(jnp.int32, (NHL, L), 1)
    selT = jnp.where((rt & (L - 1)) == lt, 1.0, 0.0)          # (NHL, L): tile rows
    ls = lax.broadcasted_iota(jnp.int32, (L, NHL), 0)
    rs = lax.broadcasted_iota(jnp.int32, (L, NHL), 1)
    sel = jnp.where((rs & (L - 1)) == ls, 1.0, 0.0)           # (L, NHL): gather rows

    # ---------------- MHA block ----------------
    # LayerNorm over normalized_shape=(N, E) -> reduce over the full N*E axis.
    mu = jnp.mean(x, axis=-1, keepdims=True)
    var = jnp.mean((x - mu) ** 2, axis=-1, keepdims=True)
    ln1 = (x - mu) * lax.rsqrt(var + EPS) * g1 + be1

    q = (jnp.dot(ln1, wq, preferred_element_type=f32) + bq) * SCALE   # (L, NE)
    k = jnp.dot(ln1, wk, preferred_element_type=f32) + bk
    v = jnp.dot(ln1, wv, preferred_element_type=f32) + bv

    # qe[r, c] = q[r % L, c] if column c belongs to block r // L else 0
    qe = jnp.dot(selT, q, preferred_element_type=f32) * blkmask       # (NHL, NE)
    # s[r, m] = <q_{b,l}, k_{b,m}> for r = b*L + l  (single MXU op, trans_b)
    s = lax.dot_general(qe, k, (((1,), (1,)), ((), ())),
                        preferred_element_type=f32)                   # (NHL, L)
    s = s - jnp.max(s, axis=-1, keepdims=True)
    p = jnp.exp(s)
    p = p * pl.reciprocal(jnp.sum(p, axis=-1, keepdims=True), approx=True)
    # of[r, c] = sum_m p[r, m] * v[m, c], masked to the row's block
    of = jnp.dot(p, v, preferred_element_type=f32) * blkmask          # (NHL, NE)
    # o[l, c] = of[(c // DH) * L + l, c]  (head outputs back into lane layout)
    o = jnp.dot(sel, of, preferred_element_type=f32)                  # (L, NE)

    mo = jnp.dot(o, wo, preferred_element_type=f32) + bo              # out proj
    y1 = x + mo                                                       # residual

    # ---------------- FeedForward block ----------------
    mu2 = jnp.mean(y1, axis=-1, keepdims=True)
    var2 = jnp.mean((y1 - mu2) ** 2, axis=-1, keepdims=True)
    ln2 = (y1 - mu2) * lax.rsqrt(var2 + EPS) * g2 + be2

    hid = jnp.maximum(jnp.dot(ln2, w1, preferred_element_type=f32) + b1, 0.0)
    fn = jnp.dot(hid, w2, preferred_element_type=f32) + b2
    out_ref[...] = y1 + fn


# ---------------- wrapper: parameter packing + pallas_call ----------------
def _block_diag(w, n):
    r, c = w.shape
    out = jnp.zeros((n * r, n * c), jnp.float32)
    for i in range(n):
        out = out.at[i * r:(i + 1) * r, i * c:(i + 1) * c].set(w)
    return out


def _row8(vec, width):
    return jnp.zeros((8, width), jnp.float32).at[0].set(vec)


def _pack_params(p):
    w64 = jnp.concatenate([
        _block_diag(p["wq"].T, N), _block_diag(p["wk"].T, N),
        _block_diag(p["wv"].T, N), _block_diag(p["wo"].T, N),
        _block_diag(p["w2"].T, N),
        _row8(jnp.tile(p["bq"], N), NE), _row8(jnp.tile(p["bk"], N), NE),
        _row8(jnp.tile(p["bv"], N), NE), _row8(jnp.tile(p["bo"], N), NE),
        _row8(jnp.tile(p["b2"], N), NE),
        _row8(p["g1"].reshape(NE), NE), _row8(p["be1"].reshape(NE), NE),
        _row8(p["g2"].reshape(NE), NE), _row8(p["be2"].reshape(NE), NE),
    ], axis=0)
    w128 = jnp.concatenate([
        _block_diag(p["w1"].T, N),
        _row8(jnp.tile(p["b1"], N), CH2),
    ], axis=0)
    assert w64.shape == (W64_ROWS, NE) and w128.shape == (W128_ROWS, CH2)
    return w64, w128


def transformer_block_pallas(x, p):
    """x: (L, N, E) float32; p: dict of PyTorch-shaped parameters."""
    w64, w128 = _pack_params(p)
    # Whole-array (grid-less) call: the entire working set is < 200 KiB.
    # TODO(synk): for the real model, add a "parallel" grid axis over many
    # sequences / blocks so both v7x TensorCores get lane-dense work.
    out2d = pl.pallas_call(
        transformer_block_kernel,
        out_shape=jax.ShapeDtypeStruct((L, NE), jnp.float32),
    )(x.reshape(L, NE), w64, w128)
    return out2d.reshape(L, N, E)


# ---------------- pure-JAX reference (for verification) ----------------
def _layernorm_ref(z, g, b):
    mu = jnp.mean(z, axis=(1, 2), keepdims=True)
    var = jnp.mean((z - mu) ** 2, axis=(1, 2), keepdims=True)
    return (z - mu) / jnp.sqrt(var + EPS) * g + b


def transformer_block_ref(x, p):
    ln1 = _layernorm_ref(x, p["g1"], p["be1"])
    q = jnp.einsum("lne,fe->lnf", ln1, p["wq"]) + p["bq"]
    k = jnp.einsum("lne,fe->lnf", ln1, p["wk"]) + p["bk"]
    v = jnp.einsum("lne,fe->lnf", ln1, p["wv"]) + p["bv"]
    q = q.reshape(L, N, H, DH)
    k = k.reshape(L, N, H, DH)
    v = v.reshape(L, N, H, DH)
    s = jnp.einsum("lnhd,mnhd->nhlm", q, k) * SCALE
    a = jax.nn.softmax(s, axis=-1)
    o = jnp.einsum("nhlm,mnhd->lnhd", a, v).reshape(L, N, E)
    mo = jnp.einsum("lne,fe->lnf", o, p["wo"]) + p["bo"]
    y1 = x + mo
    ln2 = _layernorm_ref(y1, p["g2"], p["be2"])
    hid = jax.nn.relu(jnp.einsum("lne,ce->lnc", ln2, p["w1"]) + p["b1"])
    fn = jnp.einsum("lnc,ec->lne", hid, p["w2"]) + p["b2"]
    return y1 + fn


if __name__ == "__main__":
    key = jax.random.PRNGKey(0)
    keys = jax.random.split(key, 17)

    def rnd(k, shape, scale=0.1):
        return scale * jax.random.normal(k, shape, dtype=jnp.float32)

    # Parameter shapes follow the PyTorch module __init__:
    #   LayerNorm(normalized_shape=(N, E)) x2; in/out projections (E,E);
    #   Linear(E->CH) weight (CH,E); Linear(CH->E) weight (E,CH).
    params = {
        "g1": 1.0 + rnd(keys[1], (N, E)), "be1": rnd(keys[2], (N, E)),
        "wq": rnd(keys[3], (E, E)), "bq": rnd(keys[4], (E,)),
        "wk": rnd(keys[5], (E, E)), "bk": rnd(keys[6], (E,)),
        "wv": rnd(keys[7], (E, E)), "bv": rnd(keys[8], (E,)),
        "wo": rnd(keys[9], (E, E)), "bo": rnd(keys[10], (E,)),
        "g2": 1.0 + rnd(keys[11], (N, E)), "be2": rnd(keys[12], (N, E)),
        "w1": rnd(keys[13], (CH, E)), "b1": rnd(keys[14], (CH,)),
        "w2": rnd(keys[15], (E, CH)), "b2": rnd(keys[16], (E,)),
    }
    x = jax.random.normal(keys[0], (L, N, E), dtype=jnp.float32)

    out = jax.block_until_ready(transformer_block_pallas(x, params))
    ref = transformer_block_ref(x, params)

    assert out.shape == (L, N, E)
    assert bool(jnp.allclose(out, ref, atol=2e-2, rtol=2e-2)), "mismatch vs reference"
    print("KERNEL_OK")
</pallas_src>

<mosaic_0001>
module attributes {stable_mosaic.version = 11 : i64} {
  func.func @transformer_block_kernel(%arg0: memref<8x64xf32, #tpu.memory_space<vmem>>, %arg1: memref<456x64xf32, #tpu.memory_space<vmem>>, %arg2: memref<72x128xf32, #tpu.memory_space<vmem>>, %arg3: memref<8x64xf32, #tpu.memory_space<vmem>>) attributes {dimension_semantics = [], scalar_prefetch = 0 : i64, scratch_operands = 0 : i64, tpu.core_type = #tpu.core_type<tc>} {
    %c0 = arith.constant 0 : index
    %c0_0 = arith.constant 0 : index
    %0 = vector.load %arg0[%c0, %c0_0] : memref<8x64xf32, #tpu.memory_space<vmem>>, vector<8x64xf32>
    %c0_1 = arith.constant 0 : index
    %c0_2 = arith.constant 0 : index
    %1 = vector.load %arg1[%c0_1, %c0_2] : memref<456x64xf32, #tpu.memory_space<vmem>>, vector<64x64xf32>
    %c64 = arith.constant 64 : index
    %c0_3 = arith.constant 0 : index
    %2 = vector.load %arg1[%c64, %c0_3] : memref<456x64xf32, #tpu.memory_space<vmem>>, vector<64x64xf32>
    %c128 = arith.constant 128 : index
    %c0_4 = arith.constant 0 : index
    %3 = vector.load %arg1[%c128, %c0_4] : memref<456x64xf32, #tpu.memory_space<vmem>>, vector<64x64xf32>
    %c192 = arith.constant 192 : index
    %c0_5 = arith.constant 0 : index
    %4 = vector.load %arg1[%c192, %c0_5] : memref<456x64xf32, #tpu.memory_space<vmem>>, vector<64x64xf32>
    %c256 = arith.constant 256 : index
    %c0_6 = arith.constant 0 : index
    %5 = vector.load %arg1[%c256, %c0_6] : memref<456x64xf32, #tpu.memory_space<vmem>>, vector<128x64xf32>
    %c384 = arith.constant 384 : index
    %c0_7 = arith.constant 0 : index
    %6 = vector.load %arg1[%c384, %c0_7] : memref<456x64xf32, #tpu.memory_space<vmem>>, vector<1x64xf32>
    %c392 = arith.constant 392 : index
    %c0_8 = arith.constant 0 : index
    %7 = vector.load %arg1[%c392, %c0_8] : memref<456x64xf32, #tpu.memory_space<vmem>>, vector<1x64xf32>
    %c400 = arith.constant 400 : index
    %c0_9 = arith.constant 0 : index
    %8 = vector.load %arg1[%c400, %c0_9] : memref<456x64xf32, #tpu.memory_space<vmem>>, vector<1x64xf32>
    %c408 = arith.constant 408 : index
    %c0_10 = arith.constant 0 : index
    %9 = vector.load %arg1[%c408, %c0_10] : memref<456x64xf32, #tpu.memory_space<vmem>>, vector<1x64xf32>
    %c416 = arith.constant 416 : index
    %c0_11 = arith.constant 0 : index
    %10 = vector.load %arg1[%c416, %c0_11] : memref<456x64xf32, #tpu.memory_space<vmem>>, vector<1x64xf32>
    %c424 = arith.constant 424 : index
    %c0_12 = arith.constant 0 : index
    %11 = vector.load %arg1[%c424, %c0_12] : memref<456x64xf32, #tpu.memory_space<vmem>>, vector<1x64xf32>
    %c432 = arith.constant 432 : index
    %c0_13 = arith.constant 0 : index
    %12 = vector.load %arg1[%c432, %c0_13] : memref<456x64xf32, #tpu.memory_space<vmem>>, vector<1x64xf32>
    %c440 = arith.constant 440 : index
    %c0_14 = arith.constant 0 : index
    %13 = vector.load %arg1[%c440, %c0_14] : memref<456x64xf32, #tpu.memory_space<vmem>>, vector<1x64xf32>
    %c448 = arith.constant 448 : index
    %c0_15 = arith.constant 0 : index
    %14 = vector.load %arg1[%c448, %c0_15] : memref<456x64xf32, #tpu.memory_space<vmem>>, vector<1x64xf32>
    %c0_16 = arith.constant 0 : index
    %c0_17 = arith.constant 0 : index
    %15 = vector.load %arg2[%c0_16, %c0_17] : memref<72x128xf32, #tpu.memory_space<vmem>>, vector<64x128xf32>
    %c64_18 = arith.constant 64 : index
    %c0_19 = arith.constant 0 : index
    %16 = vector.load %arg2[%c64_18, %c0_19] : memref<72x128xf32, #tpu.memory_space<vmem>>, vector<1x128xf32>
    %17 = tpu.iota {dimensions = array<i32: 0>} : vector<128x64xi32>
    %18 = tpu.iota {dimensions = array<i32: 1>} : vector<128x64xi32>
    %c3_i32 = arith.constant 3 : i32
    %19 = vector.broadcast %c3_i32 : i32 to vector<128x64xi32>
    %20 = arith.shrsi %17, %19 : vector<128x64xi32>
    %c2_i32 = arith.constant 2 : i32
    %21 = vector.broadcast %c2_i32 : i32 to vector<128x64xi32>
    %22 = arith.shrsi %18, %21 : vector<128x64xi32>
    %23 = arith.cmpi eq, %20, %22 : vector<128x64xi32>
    %cst = arith.constant 1.000000e+00 : f32
    %cst_20 = arith.constant 0.000000e+00 : f32
    %24 = vector.broadcast %cst : f32 to vector<128x64xf32>
    %25 = vector.broadcast %cst_20 : f32 to vector<128x64xf32>
    %26 = arith.select %23, %24, %25 : vector<128x64xi1>, vector<128x64xf32>
    %27 = tpu.iota {dimensions = array<i32: 0>} : vector<128x8xi32>
    %28 = tpu.iota {dimensions = array<i32: 1>} : vector<128x8xi32>
    %c7_i32 = arith.constant 7 : i32
    %29 = vector.broadcast %c7_i32 : i32 to vector<128x8xi32>
    %30 = arith.andi %27, %29 : vector<128x8xi32>
    %31 = arith.cmpi eq, %30, %28 : vector<128x8xi32>
    %cst_21 = arith.constant 1.000000e+00 : f32
    %cst_22 = arith.constant 0.000000e+00 : f32
    %32 = vector.broadcast %cst_21 : f32 to vector<128x8xf32>
    %33 = vector.broadcast %cst_22 : f32 to vector<128x8xf32>
    %34 = arith.select %31, %32, %33 : vector<128x8xi1>, vector<128x8xf32>
    %35 = tpu.iota {dimensions = array<i32: 0>} : vector<8x128xi32>
    %36 = tpu.iota {dimensions = array<i32: 1>} : vector<8x128xi32>
    %c7_i32_23 = arith.constant 7 : i32
    %37 = vector.broadcast %c7_i32_23 : i32 to vector<8x128xi32>
    %38 = arith.andi %36, %37 : vector<8x128xi32>
    %39 = arith.cmpi eq, %38, %35 : vector<8x128xi32>
    %cst_24 = arith.constant 1.000000e+00 : f32
    %cst_25 = arith.constant 0.000000e+00 : f32
    %40 = vector.broadcast %cst_24 : f32 to vector<8x128xf32>
    %41 = vector.broadcast %cst_25 : f32 to vector<8x128xf32>
    %42 = arith.select %39, %40, %41 : vector<8x128xi1>, vector<8x128xf32>
    %cst_26 = arith.constant dense<0.000000e+00> : vector<8xf32>
    %43 = vector.multi_reduction <add>, %0, %cst_26 [1] : vector<8x64xf32> to vector<8xf32>
    %44 = vector.shape_cast %43 : vector<8xf32> to vector<8x1xf32>
    %cst_27 = arith.constant 6.400000e+01 : f32
    %45 = vector.broadcast %cst_27 : f32 to vector<8x1xf32>
    %46 = arith.divf %44, %45 : vector<8x1xf32>
    %47 = vector.broadcast %46 : vector<8x1xf32> to vector<8x64xf32>
    %48 = arith.subf %0, %47 : vector<8x64xf32>
    %49 = arith.mulf %48, %48 : vector<8x64xf32>
    %cst_28 = arith.constant dense<0.000000e+00> : vector<8xf32>
    %50 = vector.multi_reduction <add>, %49, %cst_28 [1] : vector<8x64xf32> to vector<8xf32>
    %51 = vector.shape_cast %50 : vector<8xf32> to vector<8x1xf32>
    %cst_29 = arith.constant 6.400000e+01 : f32
    %52 = vector.broadcast %cst_29 : f32 to vector<8x1xf32>
    %53 = arith.divf %51, %52 : vector<8x1xf32>
    %54 = vector.broadcast %46 : vector<8x1xf32> to vector<8x64xf32>
    %55 = arith.subf %0, %54 : vector<8x64xf32>
    %cst_30 = arith.constant 9.99999974E-6 : f32
    %56 = vector.broadcast %cst_30 : f32 to vector<8x1xf32>
    %57 = arith.addf %53, %56 : vector<8x1xf32>
    %58 = math.rsqrt %57 : vector<8x1xf32>
    %59 = vector.broadcast %58 : vector<8x1xf32> to vector<8x64xf32>
    %60 = arith.mulf %55, %59 : vector<8x64xf32>
    %61 = vector.broadcast %11 : vector<1x64xf32> to vector<8x64xf32>
    %62 = arith.mulf %60, %61 : vector<8x64xf32>
    %63 = vector.broadcast %12 : vector<1x64xf32> to vector<8x64xf32>
    %64 = arith.addf %62, %63 : vector<8x64xf32>
    %cst_31 = arith.constant dense<0.000000e+00> : vector<8x64xf32>
    %65 = tpu.matmul %64, %1, %cst_31 {dimension_numbers = #tpu.dot_dimension_numbers<[1], [0], [0], [1], [0, 0, 1, 1], [], []>} : vector<8x64xf32>, vector<64x64xf32>, vector<8x64xf32> -> vector<8x64xf32>
    %66 = vector.broadcast %6 : vector<1x64xf32> to vector<8x64xf32>
    %67 = arith.addf %65, %66 : vector<8x64xf32>
    %cst_32 = arith.constant 5.000000e-01 : f32
    %68 = vector.broadcast %cst_32 : f32 to vector<8x64xf32>
    %69 = arith.mulf %67, %68 : vector<8x64xf32>
    %cst_33 = arith.constant dense<0.000000e+00> : vector<8x64xf32>
    %70 = tpu.matmul %64, %2, %cst_33 {dimension_numbers = #tpu.dot_dimension_numbers<[1], [0], [0], [1], [0, 0, 1, 1], [], []>} : vector<8x64xf32>, vector<64x64xf32>, vector<8x64xf32> -> vector<8x64xf32>
    %71 = vector.broadcast %7 : vector<1x64xf32> to vector<8x64xf32>
    %72 = arith.addf %70, %71 : vector<8x64xf32>
    %cst_34 = arith.constant dense<0.000000e+00> : vector<8x64xf32>
    %73 = tpu.matmul %64, %3, %cst_34 {dimension_numbers = #tpu.dot_dimension_numbers<[1], [0], [0], [1], [0, 0, 1, 1], [], []>} : vector<8x64xf32>, vector<64x64xf32>, vector<8x64xf32> -> vector<8x64xf32>
    %74 = vector.broadcast %8 : vector<1x64xf32> to vector<8x64xf32>
    %75 = arith.addf %73, %74 : vector<8x64xf32>
    %cst_35 = arith.constant dense<0.000000e+00> : vector<128x64xf32>
    %76 = tpu.matmul %34, %69, %cst_35 {dimension_numbers = #tpu.dot_dimension_numbers<[1], [0], [0], [1], [0, 0, 1, 1], [], []>} : vector<128x8xf32>, vector<8x64xf32>, vector<128x64xf32> -> vector<128x64xf32>
    %77 = arith.mulf %76, %26 : vector<128x64xf32>
    %cst_36 = arith.constant dense<0.000000e+00> : vector<128x8xf32>
    %78 = tpu.matmul %77, %72, %cst_36 {dimension_numbers = #tpu.dot_dimension_numbers<[1], [1], [0], [0], [0, 0, 1, 0], [], []>} : vector<128x64xf32>, vector<8x64xf32>, vector<128x8xf32> -> vector<128x8xf32>
    %cst_37 = arith.constant dense<0xFF800000> : vector<128xf32>
    %79 = vector.multi_reduction <maximumf>, %78, %cst_37 [1] : vector<128x8xf32> to vector<128xf32>
    %80 = vector.shape_cast %79 : vector<128xf32> to vector<128x1xf32>
    %81 = vector.broadcast %80 : vector<128x1xf32> to vector<128x8xf32>
    %82 = arith.subf %78, %81 : vector<128x8xf32>
    %83 = math.exp %82 : vector<128x8xf32>
    %cst_38 = arith.constant dense<0.000000e+00> : vector<128xf32>
    %84 = vector.multi_reduction <add>, %83, %cst_38 [1] : vector<128x8xf32> to vector<128xf32>
    %85 = vector.shape_cast %84 : vector<128xf32> to vector<128x1xf32>
    %86 = tpu.reciprocal %85 {approx = true} : vector<128x1xf32> -> vector<128x1xf32>
    %87 = vector.broadcast %86 : vector<128x1xf32> to vector<128x8xf32>
    %88 = arith.mulf %83, %87 : vector<128x8xf32>
    %cst_39 = arith.constant dense<0.000000e+00> : vector<128x64xf32>
    %89 = tpu.matmul %88, %75, %cst_39 {dimension_numbers = #tpu.dot_dimension_numbers<[1], [0], [0], [1], [0, 0, 1, 1], [], []>} : vector<128x8xf32>, vector<8x64xf32>, vector<128x64xf32> -> vector<128x64xf32>
    %90 = arith.mulf %89, %26 : vector<128x64xf32>
    %cst_40 = arith.constant dense<0.000000e+00> : vector<8x64xf32>
    %91 = tpu.matmul %42, %90, %cst_40 {dimension_numbers = #tpu.dot_dimension_numbers<[1], [0], [0], [1], [0, 0, 1, 1], [], []>} : vector<8x128xf32>, vector<128x64xf32>, vector<8x64xf32> -> vector<8x64xf32>
    %cst_41 = arith.constant dense<0.000000e+00> : vector<8x64xf32>
    %92 = tpu.matmul %91, %4, %cst_41 {dimension_numbers = #tpu.dot_dimension_numbers<[1], [0], [0], [1], [0, 0, 1, 1], [], []>} : vector<8x64xf32>, vector<64x64xf32>, vector<8x64xf32> -> vector<8x64xf32>
    %93 = vector.broadcast %9 : vector<1x64xf32> to vector<8x64xf32>
    %94 = arith.addf %92, %93 : vector<8x64xf32>
    %95 = arith.addf %0, %94 : vector<8x64xf32>
    %cst_42 = arith.constant dense<0.000000e+00> : vector<8xf32>
    %96 = vector.multi_reduction <add>, %95, %cst_42 [1] : vector<8x64xf32> to vector<8xf32>
    %97 = vector.shape_cast %96 : vector<8xf32> to vector<8x1xf32>
    %cst_43 = arith.constant 6.400000e+01 : f32
    %98 = vector.broadcast %cst_43 : f32 to vector<8x1xf32>
    %99 = arith.divf %97, %98 : vector<8x1xf32>
    %100 = vector.broadcast %99 : vector<8x1xf32> to vector<8x64xf32>
    %101 = arith.subf %95, %100 : vector<8x64xf32>
    %102 = arith.mulf %101, %101 : vector<8x64xf32>
    %cst_44 = arith.constant dense<0.000000e+00> : vector<8xf32>
    %103 = vector.multi_reduction <add>, %102, %cst_44 [1] : vector<8x64xf32> to vector<8xf32>
    %104 = vector.shape_cast %103 : vector<8xf32> to vector<8x1xf32>
    %cst_45 = arith.constant 6.400000e+01 : f32
    %105 = vector.broadcast %cst_45 : f32 to vector<8x1xf32>
    %106 = arith.divf %104, %105 : vector<8x1xf32>
    %107 = vector.broadcast %99 : vector<8x1xf32> to vector<8x64xf32>
    %108 = arith.subf %95, %107 : vector<8x64xf32>
    %cst_46 = arith.constant 9.99999974E-6 : f32
    %109 = vector.broadcast %cst_46 : f32 to vector<8x1xf32>
    %110 = arith.addf %106, %109 : vector<8x1xf32>
    %111 = math.rsqrt %110 : vector<8x1xf32>
    %112 = vector.broadcast %111 : vector<8x1xf32> to vector<8x64xf32>
    %113 = arith.mulf %108, %112 : vector<8x64xf32>
    %114 = vector.broadcast %13 : vector<1x64xf32> to vector<8x64xf32>
    %115 = arith.mulf %113, %114 : vector<8x64xf32>
    %116 = vector.broadcast %14 : vector<1x64xf32> to vector<8x64xf32>
    %117 = arith.addf %115, %116 : vector<8x64xf32>
    %cst_47 = arith.constant dense<0.000000e+00> : vector<8x128xf32>
    %118 = tpu.matmul %117, %15, %cst_47 {dimension_numbers = #tpu.dot_dimension_numbers<[1], [0], [0], [1], [0, 0, 1, 1], [], []>} : vector<8x64xf32>, vector<64x128xf32>, vector<8x128xf32> -> vector<8x128xf32>
    %119 = vector.broadcast %16 : vector<1x128xf32> to vector<8x128xf32>
    %120 = arith.addf %118, %119 : vector<8x128xf32>
    %cst_48 = arith.constant 0.000000e+00 : f32
    %121 = vector.broadcast %cst_48 : f32 to vector<8x128xf32>
    %122 = arith.maximumf %120, %121 : vector<8x128xf32>
    %cst_49 = arith.constant dense<0.000000e+00> : vector<8x64xf32>
    %123 = tpu.matmul %122, %5, %cst_49 {dimension_numbers = #tpu.dot_dimension_numbers<[1], [0], [0], [1], [0, 0, 1, 1], [], []>} : vector<8x128xf32>, vector<128x64xf32>, vector<8x64xf32> -> vector<8x64xf32>
    %124 = vector.broadcast %10 : vector<1x64xf32> to vector<8x64xf32>
    %125 = arith.addf %123, %124 : vector<8x64xf32>
    %126 = arith.addf %95, %125 : vector<8x64xf32>
    %c0_50 = arith.constant 0 : index
    %c0_51 = arith.constant 0 : index
    %127 = vector.load %arg3[%c0_50, %c0_51] : memref<8x64xf32, #tpu.memory_space<vmem>>, vector<8x64xf32>
    tpu.vector_store %arg3[%c0_50, %c0_51], %126 {strides = array<i32>} : memref<8x64xf32, #tpu.memory_space<vmem>>, vector<8x64xf32>,
    return
  }
}

</mosaic_0001>

<bundles_post_ra>
// kernel: tpu_custom_call.1
= control target key start
LH: loop header
LB: loop body
LE: loop exit
PB: predicated region body
PF: predicated region fallthrough
CT: control target
= control target key end

     0   :  { %vm201_vm0 = vcmask 523264   ;;  %s2928_s0 = inlined_call_operand.vmem [shape: f32[8,64], index: 0, kind: input, shape index: {}]   ;;  %s2929_s1 = inlined_call_operand.vmem [shape: f32[456,64], index: 1, kind: input, shape index: {}]   ;;  %s2930_s2 = inlined_call_operand.vmem [shape: f32[72,128], index: 2, kind: input, shape index: {}]   ;;  %s2931_s3 = inlined_call_operand.hbm [shape: f32[8,64], index: 3, kind: output, shape index: {}]  }
   0x1   :  { %v15_v0 = vld [vmem:[%s2928_s0] sm:$0xff] }
   0x2   :  { %8 = vsyncpa [#allocation3], 0  ;;  %v202_v1 = vsel %vm201_vm0, %v15_v0, 0.0  ;;  %v16_v7 = vld [vmem:[%s2929_s1] sm:$0xff]  ;;  %v17_v8 = vld [vmem:[%s2929_s1 + $0x8] sm:$0xff]  ;;  %v2226_v12 = vmov 0.0|0.0   ;;  %v82_v54 = vlaneseq }
   0x3   :  { %203 = vadd.xlane.f32.xlu0 %v202_v1  ;;  %v2021_v9 = vpack.c.bf16 %v17_v8, %v16_v7  ;;  %v32_v10 = vld [vmem:[%s2929_s1 + $0x80] sm:$0xff]  ;;  %v33_v11 = vld [vmem:[%s2929_s1 + $0x88] sm:$0xff]  ;;  %2020 = vmatprep.subr.bf16.mxu1 %v2226_v12  ;;  %v18_v14 = vld [vmem:[%s2929_s1 + $0x10] sm:$0xff]  ;;  %vm2227_vm1 = vmmov 0   ;;  %v2228_v19 = vmov 0.0   ;;  %vm452_vm3 = vcmask 64512  }
   0x4   :  { %2044 = vmatprep.subr.bf16.mxu0 %v2226_v12  ;;  %v2045_v13 = vpack.c.bf16 %v33_v11, %v32_v10  ;;  %v19_v15 = vld [vmem:[%s2929_s1 + $0x18] sm:$0xff]  ;;  %v34_v16 = vld [vmem:[%s2929_s1 + $0x90] sm:$0xff]  ;;  %1793 = vmatprep.mubr.msk.f32.mxu1 %vm2227_vm1, %v2228_v19  ;;  %v20_v21 = vld [vmem:[%s2929_s1 + $0x20] sm:$0xff]  ;;  %v2355_v55 = vshrl.u32 %v82_v54, 7  ;;  %v2357_v56 = vand.u32 127, %v82_v54  ;;  %s2230_s11 = smov [#allocation2]  }
   0x5   :  { %2022 = vmatpush3.bf16.msra.mxu1 %v2021_v9  ;;  %v2024_v17 = vpack.c.bf16 %v19_v15, %v18_v14  ;;  %v35_v18 = vld [vmem:[%s2929_s1 + $0x98] sm:$0xff]  ;;  %v21_v22 = vld [vmem:[%s2929_s1 + $0x28] sm:$0xff]  ;;  %v36_v23 = vld [vmem:[%s2929_s1 + $0xa0] sm:$0xff]  ;;  %1831 = vmatprep.mubr.msk.f32.mxu0 %vm2227_vm1, %v2228_v19  ;;  %s1574_s12 = sshll.u32 %s2230_s11, 4  ;;  %s1575_s12 = int_to_ptr.vmem [resolvable:$true] %s1574_s12 }
   0x6   :  { %2046 = vmatpush3.bf16.msra.mxu0 %v2045_v13  ;;  %2023 = vmatprep.subr.bf16.mxu1 %v2226_v12  ;;  %v2048_v20 = vpack.c.bf16 %v35_v18, %v34_v16  ;;  %v37_v24 = vld [vmem:[%s2929_s1 + $0xa8] sm:$0xff]  ;;  %v2027_v25 = vpack.c.bf16 %v21_v22, %v20_v21  ;;  %v22_v27 = vld [vmem:[%s2929_s1 + $0x30] sm:$0xff]  ;;  %v23_v28 = vld [vmem:[%s2929_s1 + $0x38] sm:$0xff]  ;;  %v150_v57 = vand.u32 7, %v2355_v55  ;;  %v2364_v59 = vadd.s32 8, %v2355_v55  ;;  %p2207_p1 = scmp.lt.s32.totalorder %s1575_s12, %s1575_s12 }
   0x7   :  { %2047 = vmatprep.subr.bf16.mxu0 %v2226_v12  ;;  %v2051_v26 = vpack.c.bf16 %v37_v24, %v36_v23  ;;  %v38_v29 = vld [vmem:[%s2929_s1 + $0xb0] sm:$0xff]  ;;  %v39_v30 = vld [vmem:[%s2929_s1 + $0xb8] sm:$0xff]  ;;  %v2030_v31 = vpack.c.bf16 %v23_v28, %v22_v27  ;;  %v1582_v37 = vld [vmem:[%s2929_s1 + $0x1a8] ss:$0 sm:$0xff]  ;;  %v2367_v60 = vadd.s32 16, %v2355_v55  ;;  %v2371_v62 = vadd.s32 24, %v2355_v55 }
   0x8   :  { %v2054_v32 = vpack.c.bf16 %v39_v30, %v38_v29  ;;  %v24_v39 = vld [vmem:[%s2929_s1 + $0x40] sm:$0xff]  ;;  %v25_v40 = vld [vmem:[%s2929_s1 + $0x48] sm:$0xff]  ;;  %v1583_v41 = vld [vmem:[%s2929_s1 + $0x1b0] ss:$0 sm:$0xff]  ;;  %vm166_vm2 = vcmp.eq.s32.totalorder %v150_v57, %v2357_v56  ;;  %v151_v61 = vand.u32 7, %v2364_v59  ;;  %v2374_v63 = vadd.s32 32, %v2355_v55 }
   0x9   :  { %2025 = vmatpush3.bf16.msra.mxu1 %v2024_v17  ;;  %v2033_v43 = vpack.c.bf16 %v25_v40, %v24_v39  ;;  %v26_v45 = vld [vmem:[%s2929_s1 + $0x50] sm:$0xff]  ;;  %v27_v46 = vld [vmem:[%s2929_s1 + $0x58] sm:$0xff]  ;;  %v28_v48 = vld [vmem:[%s2929_s1 + $0x60] sm:$0xff]  ;;  %v182_v58 = vsel %vm166_vm2, 1.0, %v2228_v19  ;;  %v2388_v10 = vadd.s32 48, %v2355_v55  ;;  %v2403_v21 = vadd.s32 64, %v2355_v55 }
   0xa   :  { %2049 = vmatpush3.bf16.msra.mxu0 %v2048_v20  ;;  %2026 = vmatprep.subr.bf16.mxu1 %v2226_v12  ;;  %v2036_v47 = vpack.c.bf16 %v27_v46, %v26_v45  ;;  %v29_v49 = vld [vmem:[%s2929_s1 + $0x68] sm:$0xff]  ;;  %v30_v51 = vld [vmem:[%s2929_s1 + $0x70] sm:$0xff]  ;;  %v31_v52 = vld [vmem:[%s2929_s1 + $0x78] sm:$0xff]  ;;  %vm167_vm4 = vcmp.eq.s32.totalorder %v151_v61, %v2357_v56  ;;  %v2400_v20 = vadd.s32 56, %v2355_v55  ;;  %v2418_v27 = vadd.s32 80, %v2355_v55 }
   0xb   :  { %2050 = vmatprep.subr.bf16.mxu0 %v2226_v12  ;;  %v2039_v50 = vpack.c.bf16 %v29_v49, %v28_v48  ;;  %v2042_v53 = vpack.c.bf16 %v31_v52, %v30_v51  ;;  %v1584_v1 = vld [vmem:[%s2929_s1 + $0x180] ss:$0 sm:$0xff]  ;;  %v1588_v11 = vld [vmem:[%s2929_s1 + $0x190] ss:$0 sm:$0xff]  ;;  %v183_v14 = vsel %vm167_vm4, 1.0, %v2228_v19  ;;  %v156_v18 = vand.u32 7, %v2388_v10 }
   0xc   :  { %v157_v24 = vand.u32 7, %v2400_v20  ;;  %v2482_v57 = vshra.s32 %v2357_v56, 2  ;;  %v102_v61 = vshra.s32 %v2364_v59, 3  ;;  %v105_v59 = vshra.s32 %v2374_v63, 3 }
   0xd   :  { %2028 = vmatpush3.bf16.msra.mxu1 %v2027_v25  ;;  %vm172_vm9 = vcmp.eq.s32.totalorder %v156_v18, %v2357_v56  ;;  %v158_v25 = vand.u32 7, %v2403_v21 }
   0xe   :  { %2052 = vmatpush3.bf16.msra.mxu0 %v2051_v26  ;;  %2029 = vmatprep.subr.bf16.mxu1 %v2226_v12  ;;  %v2414_v26 = vadd.s32 72, %v2355_v55  ;;  %v188_v29 = vsel %vm172_vm9, 1.0, %v2228_v19  ;;  %vm173_vm10 = vcmp.eq.s32.totalorder %v157_v24, %v2357_v56 }
   0xf   :  { %2053 = vmatprep.subr.bf16.mxu0 %v2226_v12  ;;  %vm174_vm11 = vcmp.eq.s32.totalorder %v158_v25, %v2357_v56 }
  0x10   :  { %v159_v30 = vand.u32 7, %v2414_v26  ;;  %v110_v18 = vshra.s32 %v2414_v26, 3 }
  0x11   :  { %2031 = vmatpush3.bf16.msra.mxu1 %v2030_v31  ;;  %v2428_v31 = vadd.s32 88, %v2355_v55 }
  0x12   :  { %2055 = vmatpush3.bf16.msra.mxu0 %v2054_v32  ;;  %2032 = vmatprep.subr.bf16.mxu1 %v2226_v12  ;;  %v1586_v32 = vld [vmem:[%s2929_s1 + $0x188] ss:$0 sm:$0xff]  ;;  %vm175_vm12 = vcmp.eq.s32.totalorder %v159_v30, %v2357_v56 }
  0x13   :  { %v161_v40 = vand.u32 7, %v2428_v31  ;;  %v112_v26 = vshra.s32 %v2428_v31, 3 }
  0x15   :  { %vm177_vm14 = vcmp.eq.s32.totalorder %v161_v40, %v2357_v56 }
  0x16   :  { %v193_v49 = vsel %vm177_vm14, 1.0, %v2228_v19  ;;  %vm127_vm14 = vcmp.eq.s32.totalorder %v110_v18, %v2482_v57 }
  0x90   :  { %v204_v2 = vpop.xlane.xlu0 %203 }
  0x91   :  { %v206_v3 = vmul.f32 0.015625, %v204_v2 }
  0x93   :  { %v207_v4 = vsub.f32 %v15_v0, %v206_v3  ;;  %v152_v0 = vand.u32 7, %v2367_v60 }
  0x95   :  { %v208_v5 = vmul.f32 %v207_v4, %v207_v4  ;;  %vm168_vm5 = vcmp.eq.s32.totalorder %v152_v0, %v2357_v56  ;;  %v104_v0 = vshra.s32 %v2371_v62, 3 }
  0x96   :  { %v184_v15 = vsel %vm168_vm5, 1.0, %v2228_v19 }
  0x97   :  { %v209_v6 = vsel %vm201_vm0, %v208_v5, 0.0  ;;  %v154_v5 = vand.u32 7, %v2374_v63  ;;  %v107_v63 = vshra.s32 %v2388_v10, 3  ;;  %v109_v10 = vshra.s32 %v2403_v21, 3 }
  0x98   :  { %210 = vadd.xlane.f32.xlu0 %v209_v6  ;;  %v2384_v6 = vadd.s32 40, %v2355_v55  ;;  %v111_v21 = vshra.s32 %v2418_v27, 3 }
  0x99   :  { %vm170_vm7 = vcmp.eq.s32.totalorder %v154_v5, %v2357_v56 }
  0x9a   :  { %v155_v16 = vand.u32 7, %v2384_v6  ;;  %v186_v23 = vsel %vm170_vm7, 1.0, %v2228_v19  ;;  %vm119_vm7 = vcmp.eq.s32.totalorder %v102_v61, %v2482_v57 }
  0x9c   :  { %vm171_vm8 = vcmp.eq.s32.totalorder %v155_v16, %v2357_v56 }
  0x9d   :  { %v187_v28 = vsel %vm171_vm8, 1.0, %v2228_v19  ;;  %vm121_vm8 = vcmp.eq.s32.totalorder %v104_v0, %v2482_v57 }
 0x125   :  { %v211_v33 = vpop.xlane.xlu0 %210 }
 0x126   :  { %v212_v34 = vmul.f32 0.015625, %v211_v33  ;;  %v160_v33 = vand.u32 7, %v2418_v27 }
 0x128   :  { %v213_v35 = vadd.f32 1e-05, %v212_v34  ;;  %v2435_v34 = vadd.s32 96, %v2355_v55  ;;  %vm176_vm13 = vcmp.eq.s32.totalorder %v160_v33, %v2357_v56 }
 0x129   :  { %v192_v45 = vsel %vm176_vm13, 1.0, %v2228_v19  ;;  %vm124_vm13 = vcmp.eq.s32.totalorder %v107_v63, %v2482_v57 }
 0x12a   :  { %2133 = vrsqrt.f32 %v213_v35  ;;  %v113_v27 = vshra.s32 %v2435_v34, 3 }
 0x134   :  { %v2134_v36 = vpop.eup %2133 }
 0x135   :  { %v215_v38 = vmul.f32 %v2134_v36, %v207_v4  ;;  %v153_v4 = vand.u32 7, %v2371_v62  ;;  %v189_v36 = vsel %vm173_vm10, 1.0, %v2228_v19 }
 0x137   :  { %v220_v42 = vmul.f32 %v1582_v37, %v215_v38  ;;  %vm169_vm6 = vcmp.eq.s32.totalorder %v153_v4, %v2357_v56  ;;  %v190_v37 = vsel %vm174_vm11, 1.0, %v2228_v19  ;;  %v2496_v4 = vsel %vm119_vm7, 1.0, %v2228_v19 }
 0x138   :  { %v185_v22 = vsel %vm169_vm6, 1.0, %v2228_v19  ;;  %vm122_vm11 = vcmp.eq.s32.totalorder %v105_v59, %v2482_v57 }
 0x139   :  { %v225_v44 = vadd.f32 %v1583_v41, %v220_v42  ;;  %v2444_v41 = vadd.s32 104, %v2355_v55  ;;  %v162_v42 = vand.u32 7, %v2435_v34 }
 0x13b   :  { %1794 = vmatmul.mubr.msk.f32.vlgmr.msra.gmra.mrb[0].mxu1 %vm201_vm0, %v225_v44  ;;  %1832 = vmatmul.mubr.msk.f32.vlgmr.msra.gmra.mrb[0].mxu0 %vm201_vm0, %v225_v44  ;;  %v163_v46 = vand.u32 7, %v2444_v41  ;;  %vm178_vm15 = vcmp.eq.s32.totalorder %v162_v42, %v2357_v56  ;;  %v114_v31 = vshra.s32 %v2444_v41, 3 }
 0x13c   :  { %2034 = vmatpush3.bf16.msra.mxu1 %v2033_v43  ;;  %1812 = vmatprep.mubr.msk.f32.mxu1 %vm2227_vm1, %v2228_v19  ;;  %v2449_v43 = vadd.s32 112, %v2355_v55 }
 0x13d   :  { %2035 = vmatprep.subr.bf16.mxu1 %v2226_v12  ;;  %vm179_vm2 = vcmp.eq.s32.totalorder %v163_v46, %v2357_v56 }
 0x13e   :  { %v164_v48 = vand.u32 7, %v2449_v43  ;;  %v195_v52 = vsel %vm179_vm2, 1.0, %v2228_v19  ;;  %vm129_vm2 = vcmp.eq.s32.totalorder %v112_v26, %v2482_v57  ;;  %v115_v34 = vshra.s32 %v2449_v43, 3 }
 0x13f   :  { %v2559_v42 = vsel %vm129_vm2, 1.0, %v2228_v19 }
 0x140   :  { %2037 = vmatpush3.bf16.msra.mxu1 %v2036_v47  ;;  %v2460_v47 = vadd.s32 120, %v2355_v55  ;;  %vm180_vm4 = vcmp.eq.s32.totalorder %v164_v48, %v2357_v56 }
 0x141   :  { %2038 = vmatprep.subr.bf16.mxu1 %v2226_v12 }
 0x142   :  { %v165_v51 = vand.u32 7, %v2460_v47  ;;  %v116_v41 = vshra.s32 %v2460_v47, 3 }
 0x144   :  { %2040 = vmatpush3.bf16.msra.mxu1 %v2039_v50  ;;  %v194_v50 = vsel %vm178_vm15, 1.0, %v2228_v19  ;;  %vm181_vm5 = vcmp.eq.s32.totalorder %v165_v51, %v2357_v56  ;;  %vm126_vm15 = vcmp.eq.s32.totalorder %v109_v10, %v2482_v57  ;;  %vm133_vm7 = vcmp.eq.s32.totalorder %v116_v41, %v2482_v57 }
 0x145   :  { %2041 = vmatprep.subr.bf16.mxu1 %v2226_v12  ;;  %v197_v54 = vsel %vm181_vm5, 1.0, %v2228_v19  ;;  %vm131_vm5 = vcmp.eq.s32.totalorder %v114_v31, %v2482_v57 }
 0x148   :  { %2043 = vmatpush3.bf16.msra.mxu1 %v2042_v53  ;;  %v196_v53 = vsel %vm180_vm4, 1.0, %v2228_v19  ;;  %vm128_vm4 = vcmp.eq.s32.totalorder %v111_v21, %v2482_v57 }
 0x14b   :  { %1813 = vmatmul.mubr.msk.f32.vlgmr.msra.gmra.mrb[2].mxu1 %vm201_vm0, %v225_v44  ;;  %v191_v44 = vsel %vm175_vm12, 1.0, %v2228_v19 }
 0x14c   :  { %1836 = vmatprep.mubr.msk.f32.mxu1 %vm452_vm3, %v182_v58  ;;  %v101_v58 = vshra.s32 %v2355_v55, 3 }
 0x14e   :  { %vm118_vm6 = vcmp.eq.s32.totalorder %v101_v58, %v2482_v57 }
 0x20e   :  { %v299_v2 = vpop.f32.mrb[0].mxu1  ;;  %v448_v3 = vpop.f32.mrb[0].mxu0 }
 0x20f   :  { %v300_v7 = vadd.f32 %v1584_v1, %v299_v2  ;;  %v1795_v8 = vpop.f32.mrb[1].mxu1  ;;  %v1833_v9 = vpop.f32.mrb[1].mxu0  ;;  %v449_v17 = vadd.f32 %v1588_v11, %v448_v3  ;;  %v103_v1 = vshra.s32 %v2367_v60, 3  ;;  %v2491_v2 = vsel %vm118_vm6, 1.0, %v2228_v19 }
 0x210   :  { %v106_v3 = vshra.s32 %v2384_v6, 3  ;;  %v108_v6 = vshra.s32 %v2400_v20, 3  ;;  %vm130_vm6 = vcmp.eq.s32.totalorder %v113_v27, %v2482_v57 }
 0x211   :  { %v303_v13 = vmul.f32 0.5, %v300_v7  ;;  %vm120_vm9 = vcmp.eq.s32.totalorder %v103_v1, %v2482_v57  ;;  %v2502_v7 = vsel %vm121_vm8, 1.0, %v2228_v19  ;;  %v2576_v51 = vsel %vm130_vm6, 1.0, %v2228_v19 }
 0x212   :  { %v2506_v9 = vsel %vm120_vm9, 1.0, %v2228_v19  ;;  %vm123_vm10 = vcmp.eq.s32.totalorder %v106_v3, %v2482_v57  ;;  %vm125_vm12 = vcmp.eq.s32.totalorder %v108_v6, %v2482_v57  ;;  %vm132_vm8 = vcmp.eq.s32.totalorder %v115_v34, %v2482_v57 }
 0x213   :  { %1834 = vmatprep.subr.mxu1 %v303_v13  ;;  %v2517_v16 = vsel %vm123_vm10, 1.0, %v2228_v19  ;;  %v2531_v25 = vsel %vm125_vm12, 1.0, %v2228_v19  ;;  %v2588_v58 = vsel %vm132_vm8, 1.0, %v2228_v19 }
 0x214   :  { %1835 = vmatpush3.msra.mxu1 %v303_v13 }
 0x215   :  { %1837 = vmatmul.mubr.msk.f32.vlgmr.msra.gmra.mrb[4].mxu1 %vm452_vm3, %v183_v14  ;;  %1886 = vmatprep.subr.mxu1 %v449_v17 }
 0x216   :  { %1887 = vmatpush3.msra.mxu1 %v449_v17  ;;  %1839 = vmatprep.mubr.msk.f32.mxu1 %vm452_vm3, %v184_v15  ;;  %v2520_v17 = vsel %vm122_vm11, 1.0, %v2228_v19 }
 0x217   :  { %2092 = vmatprep.subr.bf16.mxu1 %v2226_v12 }
 0x219   :  { %1840 = vmatmul.mubr.msk.f32.gmra.mrb[6].mxu1 %vm452_vm3, %v185_v22 }
 0x21a   :  { %1842 = vmatprep.mubr.msk.f32.mxu1 %vm452_vm3, %v186_v23 }
 0x21d   :  { %1843 = vmatmul.mubr.msk.f32.gmra.mrb[8].mxu1 %vm452_vm3, %v187_v28  ;;  %v2534_v28 = vsel %vm124_vm13, 1.0, %v2228_v19 }
 0x21e   :  { %v374_v35 = vpop.f32.mrb[2].mxu1  ;;  %1845 = vmatprep.mubr.msk.f32.mxu1 %vm452_vm3, %v188_v29 }
 0x21f   :  { %v375_v38 = vadd.f32 %v1586_v32, %v374_v35  ;;  %v1814_v39 = vpop.f32.mrb[3].mxu1  ;;  %v2545_v35 = vsel %vm127_vm14, 1.0, %v2228_v19 }
 0x221   :  { %1860 = vmatprep.subr.msk.mxu0 %vm201_vm0, %v375_v38  ;;  %1846 = vmatmul.mubr.msk.f32.gmra.mrb[10].mxu1 %vm452_vm3, %v189_v36  ;;  %v2548_v36 = vsel %vm126_vm15, 1.0, %v2228_v19 }
 0x222   :  { %1861 = vmatpush3.xpose.msk.msra.mxu0 %vm201_vm0, %v375_v38  ;;  %1848 = vmatprep.mubr.msk.f32.mxu1 %vm452_vm3, %v190_v37 }
 0x223   :  { %2056 = vmatprep.subr.bf16.mxu0 %v2226_v12 }
 0x225   :  { %1849 = vmatmul.mubr.msk.f32.gmra.mrb[12].mxu1 %vm452_vm3, %v191_v44  ;;  %v2562_v44 = vsel %vm128_vm4, 1.0, %v2228_v19 }
 0x226   :  { %1851 = vmatprep.mubr.msk.f32.mxu1 %vm452_vm3, %v192_v45 }
 0x229   :  { %1852 = vmatmul.mubr.msk.f32.gmra.mrb[14].mxu1 %vm452_vm3, %v193_v49 }
 0x22a   :  { %1854 = vmatprep.mubr.msk.f32.mxu1 %vm452_vm3, %v194_v50  ;;  %v2573_v50 = vsel %vm131_vm5, 1.0, %v2228_v19 }
 0x22d   :  { %1855 = vmatmul.mubr.msk.f32.gmra.mrb[16].mxu1 %vm452_vm3, %v195_v52 }
 0x22e   :  { %1857 = vmatprep.mubr.msk.f32.mxu1 %vm452_vm3, %v196_v53 }
 0x231   :  { %1858 = vmatmul.mubr.msk.f32.gmra.mrb[18].mxu1 %vm452_vm3, %v197_v54  ;;  %v2585_v54 = vsel %vm133_vm7, 1.0, %v2228_v19 }
 0x2e8   :  { %v1838_v5 = vpop.f32.mrb[4].mxu1 }
 0x2e9   :  { %v567_v62 = vpop.f32.mrb[5].mxu1  ;;  %v647_v8 = vmul.f32 %v1838_v5, %v2496_v4 }
 0x2ea   :  { %v646_v60 = vmul.f32 %v567_v62, %v2491_v2 }
 0x2ec   :  { %v1841_v11 = vpop.f32.mrb[6].mxu1  ;;  %1862 = vmatprep.mubr.msk.f32.mxu0 %vm201_vm0, %v646_v60 }
 0x2ed   :  { %v649_v13 = vmul.f32 %v1841_v11, %v2502_v7  ;;  %v577_v14 = vpop.f32.mrb[7].mxu1  ;;  %1863 = vmatmul.mubr.msk.f32.vlgmr.msra.gmra.mrb[2].mxu0 %vm201_vm0, %v647_v8 }
 0x2ee   :  { %v648_v15 = vmul.f32 %v577_v14, %v2506_v9 }
 0x2f0   :  { %v1844_v20 = vpop.f32.mrb[8].mxu1  ;;  %1865 = vmatprep.mubr.msk.f32.mxu0 %vm201_vm0, %v648_v15 }
 0x2f1   :  { %v651_v22 = vmul.f32 %v1844_v20, %v2517_v16  ;;  %v587_v23 = vpop.f32.mrb[9].mxu1  ;;  %1866 = vmatmul.mubr.msk.f32.gmra.mrb[4].mxu0 %vm201_vm0, %v649_v13 }
 0x2f2   :  { %v650_v24 = vmul.f32 %v587_v23, %v2520_v17 }
 0x2f4   :  { %v1847_v29 = vpop.f32.mrb[10].mxu1  ;;  %1868 = vmatprep.mubr.msk.f32.mxu0 %vm201_vm0, %v650_v24 }
 0x2f5   :  { %v653_v30 = vmul.f32 %v1847_v29, %v2531_v25  ;;  %v597_v32 = vpop.f32.mrb[11].mxu1  ;;  %1869 = vmatmul.mubr.msk.f32.gmra.mrb[6].mxu0 %vm201_vm0, %v651_v22 }
 0x2f6   :  { %v652_v33 = vmul.f32 %v597_v32, %v2534_v28 }
 0x2f8   :  { %v1850_v37 = vpop.f32.mrb[12].mxu1  ;;  %1871 = vmatprep.mubr.msk.f32.mxu0 %vm201_vm0, %v652_v33 }
 0x2f9   :  { %v655_v38 = vmul.f32 %v1850_v37, %v2545_v35  ;;  %v607_v39 = vpop.f32.mrb[13].mxu1  ;;  %1872 = vmatmul.mubr.msk.f32.gmra.mrb[8].mxu0 %vm201_vm0, %v653_v30 }
 0x2fa   :  { %v654_v40 = vmul.f32 %v607_v39, %v2548_v36 }
 0x2fc   :  { %v1853_v45 = vpop.f32.mrb[14].mxu1  ;;  %1874 = vmatprep.mubr.msk.f32.mxu0 %vm201_vm0, %v654_v40 }
 0x2fd   :  { %v657_v46 = vmul.f32 %v1853_v45, %v2559_v42  ;;  %v617_v48 = vpop.f32.mrb[15].mxu1  ;;  %1875 = vmatmul.mubr.msk.f32.gmra.mrb[10].mxu0 %vm201_vm0, %v655_v38 }
 0x2fe   :  { %v656_v49 = vmul.f32 %v617_v48, %v2562_v44 }
 0x300   :  { %v1856_v47 = vpop.f32.mrb[16].mxu1  ;;  %1877 = vmatprep.mubr.msk.f32.mxu0 %vm201_vm0, %v656_v49 }
 0x301   :  { %v659_v43 = vmul.f32 %v1856_v47, %v2573_v50  ;;  %v627_v52 = vpop.f32.mrb[17].mxu1  ;;  %1878 = vmatmul.mubr.msk.f32.gmra.mrb[12].mxu0 %vm201_vm0, %v657_v46 }
 0x302   :  { %v658_v53 = vmul.f32 %v627_v52, %v2576_v51 }
 0x304   :  { %v1859_v61 = vpop.f32.mrb[18].mxu1  ;;  %1880 = vmatprep.mubr.msk.f32.mxu0 %vm201_vm0, %v658_v53 }
 0x305   :  { %v661_v0 = vmul.f32 %v1859_v61, %v2585_v54  ;;  %v637_v1 = vpop.f32.mrb[19].mxu1  ;;  %1881 = vmatmul.mubr.msk.f32.gmra.mrb[14].mxu0 %vm201_vm0, %v659_v43 }
 0x306   :  { %v660_v57 = vmul.f32 %v637_v1, %v2588_v58 }
 0x308   :  { %1883 = vmatprep.mubr.msk.f32.mxu0 %vm201_vm0, %v660_v57 }
 0x309   :  { %1884 = vmatmul.mubr.msk.f32.gmra.mrb[16].mxu0 %vm201_vm0, %v661_v0 }
 0x30a   :  { %1944 = vmatprep.mubr.msk.f32.mxu0 %vm2227_vm1, %v2228_v19 }
 0x3c0   :  { %v1864_v3 = vpop.f32.mrb[2].mxu0 }
 0x3c1   :  { %v779_v5 = vpop.f32.mrb[3].mxu0  ;;  %v861_v8 = vsel %vm452_vm3, %v1864_v3, -inf }
 0x3c2   :  { %v858_v59 = vsel %vm452_vm3, %v779_v5, -inf }
 0x3c3   :  { %859 = vmax.xlane.f32.xlu1 %v858_v59 }
 0x3c4   :  { %v1867_v62 = vpop.f32.mrb[4].mxu0 }
 0x3c5   :  { %v789_v60 = vpop.f32.mrb[5].mxu0  ;;  %v867_v13 = vsel %vm452_vm3, %v1867_v62, -inf }
 0x3c6   :  { %v864_v6 = vsel %vm452_vm3, %v789_v60, -inf }
 0x3c7   :  { %862 = vmax.xlane.f32.xlu1 %v861_v8  ;;  %865 = vmax.xlane.f32.xlu0 %v864_v6 }
 0x3c8   :  { %v2601_v11 = vpop.f32.mrb[6].mxu0 }
 0x3c9   :  { %v799_v63 = vpop.f32.mrb[7].mxu0  ;;  %v873_v20 = vsel %vm452_vm3, %v2601_v11, -inf }
 0x3ca   :  { %v870_v14 = vsel %vm452_vm3, %v799_v63, -inf }
 0x3cb   :  { %868 = vmax.xlane.f32.xlu1 %v867_v13  ;;  %871 = vmax.xlane.f32.xlu0 %v870_v14 }
 0x3cc   :  { %v2605_v15 = vpop.f32.mrb[8].mxu0 }
 0x3cd   :  { %v809_v18 = vpop.f32.mrb[9].mxu0  ;;  %v879_v24 = vsel %vm452_vm3, %v2605_v15, -inf }
 0x3ce   :  { %v876_v10 = vsel %vm452_vm3, %v809_v18, -inf }
 0x3cf   :  { %874 = vmax.xlane.f32.xlu1 %v873_v20  ;;  %877 = vmax.xlane.f32.xlu0 %v876_v10 }
 0x3d0   :  { %v2610_v22 = vpop.f32.mrb[10].mxu0 }
 0x3d1   :  { %v819_v23 = vpop.f32.mrb[11].mxu0  ;;  %v885_v30 = vsel %vm452_vm3, %v2610_v22, -inf }
 0x3d2   :  { %v882_v26 = vsel %vm452_vm3, %v819_v23, -inf }
 0x3d3   :  { %880 = vmax.xlane.f32.xlu1 %v879_v24  ;;  %883 = vmax.xlane.f32.xlu0 %v882_v26 }
 0x3d4   :  { %v2615_v29 = vpop.f32.mrb[12].mxu0 }
 0x3d5   :  { %v2617_v21 = vpop.f32.mrb[13].mxu0  ;;  %v891_v37 = vsel %vm452_vm3, %v2615_v29, -inf }
 0x3d6   :  { %v888_v32 = vsel %vm452_vm3, %v2617_v21, -inf }
 0x3d7   :  { %886 = vmax.xlane.f32.xlu1 %v885_v30  ;;  %889 = vmax.xlane.f32.xlu0 %v888_v32 }
 0x3d8   :  { %v2623_v33 = vpop.f32.mrb[14].mxu0 }
 0x3d9   :  { %v2625_v31 = vpop.f32.mrb[15].mxu0  ;;  %v897_v40 = vsel %vm452_vm3, %v2623_v33, -inf }
 0x3da   :  { %v894_v27 = vsel %vm452_vm3, %v2625_v31, -inf }
 0x3db   :  { %892 = vmax.xlane.f32.xlu1 %v891_v37  ;;  %895 = vmax.xlane.f32.xlu0 %v894_v27 }
 0x3dc   :  { %v2631_v38 = vpop.f32.mrb[16].mxu0 }
 0x3dd   :  { %v2633_v39 = vpop.f32.mrb[17].mxu0  ;;  %v903_v45 = vsel %vm452_vm3, %v2631_v38, -inf }
 0x3de   :  { %v900_v41 = vsel %vm452_vm3, %v2633_v39, -inf }
 0x3df   :  { %898 = vmax.xlane.f32.xlu1 %v897_v40  ;;  %901 = vmax.xlane.f32.xlu0 %v900_v41 }
 0x3e3   :  { %904 = vmax.xlane.f32.xlu1 %v903_v45 }
 0x450   :  { %v860_v34 = vpop.xlane.xlu1 %859 }
 0x451   :  { %v906_v46 = vsub.f32 %v779_v5, %v860_v34 }
 0x453   :  { %v922_v48 = vmul.f32 1.442695, %v906_v46 }
 0x454   :  { %v863_v49 = vpop.xlane.xlu1 %862  ;;  %v866_v47 = vpop.xlane.xlu0 %865 }
 0x455   :  { %2135 = vpow2.f32 %v922_v48  ;;  %v907_v43 = vsub.f32 %v1864_v3, %v863_v49  ;;  %v908_v52 = vsub.f32 %v789_v60, %v866_v47 }
 0x457   :  { %v924_v53 = vmul.f32 1.442695, %v907_v43  ;;  %v926_v61 = vmul.f32 1.442695, %v908_v52 }
 0x458   :  { %v869_v0 = vpop.xlane.xlu1 %868  ;;  %v872_v1 = vpop.xlane.xlu0 %871 }
 0x459   :  { %2137 = vpow2.f32 %v924_v53  ;;  %v909_v57 = vsub.f32 %v1867_v62, %v869_v0  ;;  %v910_v59 = vsub.f32 %v799_v63, %v872_v1 }
 0x45a   :  { %2139 = vpow2.f32 %v926_v61 }
 0x45b   :  { %v928_v8 = vmul.f32 1.442695, %v909_v57  ;;  %v930_v6 = vmul.f32 1.442695, %v910_v59 }
 0x45c   :  { %v875_v13 = vpop.xlane.xlu1 %874  ;;  %v878_v14 = vpop.xlane.xlu0 %877 }
 0x45d   :  { %2141 = vpow2.f32 %v928_v8  ;;  %v911_v5 = vsub.f32 %v2601_v11, %v875_v13  ;;  %v912_v20 = vsub.f32 %v809_v18, %v878_v14 }
 0x45e   :  { %2143 = vpow2.f32 %v930_v6 }
 0x45f   :  { %v2642_v10 = vpop.eup %2135  ;;  %v932_v3 = vmul.f32 1.442695, %v911_v5  ;;  %v934_v60 = vmul.f32 1.442695, %v912_v20 }
 0x460   :  { %v881_v24 = vpop.xlane.xlu1 %880  ;;  %v884_v26 = vpop.xlane.xlu0 %883  ;;  %v954_v62 = vsel %vm452_vm3, %v2642_v10, 0.0 }
 0x461   :  { %2145 = vpow2.f32 %v932_v3  ;;  %v913_v63 = vsub.f32 %v2605_v15, %v881_v24  ;;  %v914_v30 = vsub.f32 %v819_v23, %v884_v26  ;;  %955 = vadd.xlane.f32.xlu0 %v954_v62 }
 0x462   :  { %2147 = vpow2.f32 %v934_v60 }
 0x463   :  { %v2647_v32 = vpop.eup %2137  ;;  %v936_v11 = vmul.f32 1.442695, %v913_v63  ;;  %v938_v18 = vmul.f32 1.442695, %v914_v30 }
 0x464   :  { %v2649_v37 = vpop.eup %2139  ;;  %v887_v27 = vpop.xlane.xlu1 %886  ;;  %v957_v41 = vsel %vm452_vm3, %v2647_v32, 0.0 }
 0x465   :  { %v890_v40 = vpop.xlane.xlu0 %889  ;;  %2149 = vpow2.f32 %v936_v11  ;;  %v915_v45 = vsub.f32 %v2610_v22, %v887_v27  ;;  %958 = vadd.xlane.f32.xlu1 %v957_v41  ;;  %v960_v15 = vsel %vm452_vm3, %v2649_v37, 0.0 }
 0x466   :  { %v916_v34 = vsub.f32 %v2617_v21, %v890_v40  ;;  %2151 = vpow2.f32 %v938_v18  ;;  %961 = vadd.xlane.f32.xlu0 %v960_v15 }
 0x467   :  { %v2657_v23 = vpop.eup %2141  ;;  %v940_v46 = vmul.f32 1.442695, %v915_v45 }
 0x468   :  { %v942_v48 = vmul.f32 1.442695, %v916_v34  ;;  %v2659_v49 = vpop.eup %2143  ;;  %v893_v47 = vpop.xlane.xlu1 %892  ;;  %v963_v52 = vsel %vm452_vm3, %v2657_v23, 0.0 }
 0x469   :  { %v896_v43 = vpop.xlane.xlu0 %895  ;;  %2153 = vpow2.f32 %v940_v46  ;;  %v917_v22 = vsub.f32 %v2615_v29, %v893_v47  ;;  %964 = vadd.xlane.f32.xlu1 %v963_v52  ;;  %v966_v53 = vsel %vm452_vm3, %v2659_v49, 0.0 }
 0x46a   :  { %v918_v21 = vsub.f32 %v2625_v31, %v896_v43  ;;  %2155 = vpow2.f32 %v942_v48  ;;  %967 = vadd.xlane.f32.xlu0 %v966_v53 }
 0x46b   :  { %v2667_v61 = vpop.eup %2145  ;;  %v944_v0 = vmul.f32 1.442695, %v917_v22 }
 0x46c   :  { %v946_v1 = vmul.f32 1.442695, %v918_v21  ;;  %v2669_v57 = vpop.eup %2147  ;;  %v899_v59 = vpop.xlane.xlu1 %898  ;;  %v969_v6 = vsel %vm452_vm3, %v2667_v61, 0.0 }
 0x46d   :  { %v902_v8 = vpop.xlane.xlu0 %901  ;;  %2157 = vpow2.f32 %v944_v0  ;;  %v919_v29 = vsub.f32 %v2623_v33, %v899_v59  ;;  %970 = vadd.xlane.f32.xlu1 %v969_v6  ;;  %v972_v13 = vsel %vm452_vm3, %v2669_v57, 0.0 }
 0x46e   :  { %v920_v31 = vsub.f32 %v2633_v39, %v902_v8  ;;  %2159 = vpow2.f32 %v946_v1  ;;  %973 = vadd.xlane.f32.xlu0 %v972_v13 }
 0x46f   :  { %v2677_v14 = vpop.eup %2149  ;;  %v948_v5 = vmul.f32 1.442695, %v919_v29 }
 0x470   :  { %v950_v20 = vmul.f32 1.442695, %v920_v31  ;;  %v2679_v3 = vpop.eup %2151  ;;  %v905_v60 = vpop.xlane.xlu1 %904  ;;  %v975_v24 = vsel %vm452_vm3, %v2677_v14, 0.0 }
 0x471   :  { %2161 = vpow2.f32 %v948_v5  ;;  %v921_v33 = vsub.f32 %v2631_v38, %v905_v60  ;;  %976 = vadd.xlane.f32.xlu1 %v975_v24  ;;  %v978_v39 = vsel %vm452_vm3, %v2679_v3, 0.0 }
 0x472   :  { %2163 = vpow2.f32 %v950_v20  ;;  %979 = vadd.xlane.f32.xlu0 %v978_v39 }
 0x473   :  { %v2686_v26 = vpop.eup %2153  ;;  %v952_v62 = vmul.f32 1.442695, %v921_v33 }
 0x474   :  { %v2688_v63 = vpop.eup %2155  ;;  %v981_v30 = vsel %vm452_vm3, %v2686_v26, 0.0 }
 0x475   :  { %2165 = vpow2.f32 %v952_v62  ;;  %982 = vadd.xlane.f32.xlu1 %v981_v30  ;;  %v984_v11 = vsel %vm452_vm3, %v2688_v63, 0.0 }
 0x476   :  { %985 = vadd.xlane.f32.xlu0 %v984_v11 }
 0x477   :  { %v2694_v38 = vpop.eup %2157 }
 0x478   :  { %v2696_v18 = vpop.eup %2159  ;;  %v987_v27 = vsel %vm452_vm3, %v2694_v38, 0.0 }
 0x479   :  { %988 = vadd.xlane.f32.xlu1 %v987_v27  ;;  %v990_v40 = vsel %vm452_vm3, %v2696_v18, 0.0 }
 0x47a   :  { %991 = vadd.xlane.f32.xlu0 %v990_v40 }
 0x47b   :  { %v2702_v41 = vpop.eup %2161 }
 0x47c   :  { %v2704_v45 = vpop.eup %2163  ;;  %v993_v34 = vsel %vm452_vm3, %v2702_v41, 0.0 }
 0x47d   :  { %994 = vadd.xlane.f32.xlu1 %v993_v34  ;;  %v996_v15 = vsel %vm452_vm3, %v2704_v45, 0.0 }
 0x47e   :  { %997 = vadd.xlane.f32.xlu0 %v996_v15 }
 0x47f   :  { %v2710_v46 = vpop.eup %2165 }
 0x480   :  { %v999_v48 = vsel %vm452_vm3, %v2710_v46, 0.0 }
 0x481   :  { %1000 = vadd.xlane.f32.xlu1 %v999_v48 }
 0x4ee   :  { %v956_v47 = vpop.xlane.xlu0 %955 }
 0x4ef   :  { %2167 = vrcp.f32 %v956_v47 }
 0x4f2   :  { %v959_v43 = vpop.xlane.xlu1 %958 }
 0x4f3   :  { %2169 = vrcp.f32 %v959_v43  ;;  %v962_v52 = vpop.xlane.xlu0 %961 }
 0x4f4   :  { %2171 = vrcp.f32 %v962_v52 }
 0x4f6   :  { %v965_v22 = vpop.xlane.xlu1 %964 }
 0x4f7   :  { %2173 = vrcp.f32 %v965_v22  ;;  %v968_v21 = vpop.xlane.xlu0 %967 }
 0x4f8   :  { %2175 = vrcp.f32 %v968_v21 }
 0x4f9   :  { %v2168_v53 = vpop.eup %2167 }
 0x4fa   :  { %v971_v0 = vpop.xlane.xlu1 %970  ;;  %v1018_v1 = vmul.f32 %v2168_v53, %v2642_v10 }
 0x4fb   :  { %2177 = vrcp.f32 %v971_v0  ;;  %v974_v59 = vpop.xlane.xlu0 %973 }
 0x4fc   :  { %2179 = vrcp.f32 %v974_v59  ;;  %1888 = vmatprep.mubr.msk.f32.mxu1 %vm452_vm3, %v1018_v1 }
 0x4fd   :  { %v2170_v8 = vpop.eup %2169 }
 0x4fe   :  { %v2172_v6 = vpop.eup %2171  ;;  %v1019_v29 = vmul.f32 %v2170_v8, %v2647_v32  ;;  %v977_v31 = vpop.xlane.xlu1 %976 }
 0x4ff   :  { %2181 = vrcp.f32 %v977_v31  ;;  %v980_v13 = vpop.xlane.xlu0 %979  ;;  %v1020_v5 = vmul.f32 %v2172_v6, %v2649_v37 }
 0x500   :  { %2183 = vrcp.f32 %v980_v13  ;;  %1889 = vmatmul.mubr.msk.f32.vlgmr.msra.gmra.mrb[20].mxu1 %vm452_vm3, %v1019_v29 }
 0x501   :  { %v2174_v20 = vpop.eup %2173  ;;  %1891 = vmatprep.mubr.msk.f32.mxu1 %vm452_vm3, %v1020_v5 }
 0x502   :  { %v2176_v10 = vpop.eup %2175  ;;  %v983_v60 = vpop.xlane.xlu1 %982  ;;  %v1021_v24 = vmul.f32 %v2174_v20, %v2657_v23 }
 0x503   :  { %2185 = vrcp.f32 %v983_v60  ;;  %v986_v33 = vpop.xlane.xlu0 %985  ;;  %v1022_v39 = vmul.f32 %v2176_v10, %v2659_v49 }
 0x504   :  { %2187 = vrcp.f32 %v986_v33  ;;  %1892 = vmatmul.mubr.msk.f32.gmra.mrb[22].mxu1 %vm452_vm3, %v1021_v24 }
 0x505   :  { %v2178_v32 = vpop.eup %2177  ;;  %1894 = vmatprep.mubr.msk.f32.mxu1 %vm452_vm3, %v1022_v39 }
 0x506   :  { %v2180_v37 = vpop.eup %2179  ;;  %v989_v62 = vpop.xlane.xlu1 %988  ;;  %v1023_v30 = vmul.f32 %v2178_v32, %v2667_v61 }
 0x507   :  { %2189 = vrcp.f32 %v989_v62  ;;  %v992_v11 = vpop.xlane.xlu0 %991  ;;  %v1024_v27 = vmul.f32 %v2180_v37, %v2669_v57 }
 0x508   :  { %2191 = vrcp.f32 %v992_v11  ;;  %1895 = vmatmul.mubr.msk.f32.gmra.mrb[24].mxu1 %vm452_vm3, %v1023_v30 }
 0x509   :  { %v2182_v23 = vpop.eup %2181  ;;  %1897 = vmatprep.mubr.msk.f32.mxu1 %vm452_vm3, %v1024_v27 }
 0x50a   :  { %v2184_v49 = vpop.eup %2183  ;;  %v995_v40 = vpop.xlane.xlu1 %994  ;;  %v1025_v34 = vmul.f32 %v2182_v23, %v2677_v14 }
 0x50b   :  { %2193 = vrcp.f32 %v995_v40  ;;  %v998_v15 = vpop.xlane.xlu0 %997  ;;  %v1026_v48 = vmul.f32 %v2184_v49, %v2679_v3 }
 0x50c   :  { %2195 = vrcp.f32 %v998_v15  ;;  %1898 = vmatmul.mubr.msk.f32.gmra.mrb[26].mxu1 %vm452_vm3, %v1025_v34  ;;  %v198_v15 = vand.u32 7, %v2357_v56  ;;  %v42_v56 = vld [vmem:[%s2929_s1 + $0xd0] sm:$0xff] }
 0x50d   :  { %v2186_v61 = vpop.eup %2185  ;;  %1900 = vmatprep.mubr.msk.f32.mxu1 %vm452_vm3, %v1026_v48 }
 0x50e   :  { %v2188_v57 = vpop.eup %2187  ;;  %v1001_v47 = vpop.xlane.xlu1 %1000  ;;  %v1027_v43 = vmul.f32 %v2186_v61, %v2686_v26  ;;  %v2229_v61 = vmov 1.0  }
 0x50f   :  { %2197 = vrcp.f32 %v1001_v47  ;;  %v1028_v52 = vmul.f32 %v2188_v57, %v2688_v63  ;;  %v45_v47 = vld [vmem:[%s2929_s1 + $0xe8] sm:$0xff] }
 0x510   :  { %1901 = vmatmul.mubr.msk.f32.gmra.mrb[28].mxu1 %vm452_vm3, %v1027_v43 }
 0x511   :  { %v2190_v14 = vpop.eup %2189  ;;  %1903 = vmatprep.mubr.msk.f32.mxu1 %vm452_vm3, %v1028_v52  ;;  %v46_v52 = vld [vmem:[%s2929_s1 + $0xf0] sm:$0xff] }
 0x512   :  { %v2192_v22 = vpop.eup %2191  ;;  %v1029_v3 = vmul.f32 %v2190_v14, %v2694_v38  ;;  %v47_v14 = vld [vmem:[%s2929_s1 + $0xf8] sm:$0xff] }
 0x513   :  { %v1030_v21 = vmul.f32 %v2192_v22, %v2696_v18  ;;  %v2090_v22 = vpack.c.bf16 %v47_v14, %v46_v52 }
 0x514   :  { %1904 = vmatmul.mubr.msk.f32.gmra.mrb[30].mxu1 %vm452_vm3, %v1029_v3 }
 0x515   :  { %v2194_v53 = vpop.eup %2193  ;;  %1906 = vmatprep.mubr.msk.f32.mxu1 %vm452_vm3, %v1030_v21 }
 0x516   :  { %v2196_v0 = vpop.eup %2195  ;;  %v1031_v26 = vmul.f32 %v2194_v53, %v2702_v41  ;;  %v1640_v53 = vld [vmem:[%s2929_s1 + $0x198] ss:$0 sm:$0xff] }
 0x517   :  { %v1032_v63 = vmul.f32 %v2196_v0, %v2704_v45 }
 0x518   :  { %1907 = vmatmul.mubr.msk.f32.gmra.mrb[32].mxu1 %vm452_vm3, %v1031_v26 }
 0x519   :  { %v2198_v1 = vpop.eup %2197  ;;  %1909 = vmatprep.mubr.msk.f32.mxu1 %vm452_vm3, %v1032_v63 }
 0x51a   :  { %v1033_v59 = vmul.f32 %v2198_v1, %v2710_v46  ;;  %v2201_v1 = vld [vmem:[%s2928_s0] sm:$0xff] }
 0x51c   :  { %1910 = vmatmul.mubr.msk.f32.gmra.mrb[34].mxu1 %vm452_vm3, %v1033_v59  ;;  %vm199_vm3 = vcmp.eq.s32.totalorder %v198_v15, %v2355_v55  ;;  %v44_v55 = vld [vmem:[%s2929_s1 + $0xe0] sm:$0xff] }
 0x51d   :  { %1982 = vmatprep.mubr.msk.f32.mxu1 %vm2227_vm1, %v2228_v19  ;;  %v2087_v43 = vpack.c.bf16 %v45_v47, %v44_v55  ;;  %v1644_v47 = vld [vmem:[%s2930_s2 + $0x40] ss:$0 sm:$0xff] }
 0x5d3   :  { %v1890_v38 = vpop.f32.mrb[20].mxu1 }
 0x5d4   :  { %v1228_v18 = vmul.f32 %v1890_v38, %v2496_v4  ;;  %v1148_v8 = vpop.f32.mrb[21].mxu1 }
 0x5d5   :  { %v1227_v41 = vmul.f32 %v1148_v8, %v2491_v2 }
 0x5d7   :  { %v2057_v6 = vpack.c.bf16 %v1228_v18, %v1227_v41  ;;  %v1893_v45 = vpop.f32.mrb[22].mxu1  ;;  %v74_v18 = vld [vmem:[%s2930_s2 + $0x8] sm:$0xff] }
 0x5d8   :  { %v1230_v29 = vmul.f32 %v1893_v45, %v2502_v7  ;;  %v1158_v31 = vpop.f32.mrb[23].mxu1 }
 0x5d9   :  { %v1229_v13 = vmul.f32 %v1158_v31, %v2506_v9  ;;  %2058 = vmatpush3.bf16.msra.mxu0 %v2057_v6 }
 0x5da   :  { %2059 = vmatprep.subr.bf16.mxu0 %v2226_v12 }
 0x5db   :  { %v2060_v46 = vpack.c.bf16 %v1230_v29, %v1229_v13  ;;  %v1896_v5 = vpop.f32.mrb[24].mxu1  ;;  %v75_v13 = vld [vmem:[%s2930_s2 + $0x10] sm:$0xff] }
 0x5dc   :  { %v1232_v20 = vmul.f32 %v1896_v5, %v2517_v16  ;;  %v1168_v10 = vpop.f32.mrb[25].mxu1 }
 0x5dd   :  { %v1231_v4 = vmul.f32 %v1168_v10, %v2520_v17  ;;  %2061 = vmatpush3.bf16.msra.mxu0 %v2060_v46  ;;  %v76_v46 = vld [vmem:[%s2930_s2 + $0x18] sm:$0xff]  ;;  %v78_v10 = vld [vmem:[%s2930_s2 + $0x28] sm:$0xff] }
 0x5de   :  { %2062 = vmatprep.subr.bf16.mxu0 %v2226_v12  ;;  %v2096_v5 = vpack.c.bf16 %v76_v46, %v75_v13 }
 0x5df   :  { %v2063_v2 = vpack.c.bf16 %v1232_v20, %v1231_v4  ;;  %v1899_v60 = vpop.f32.mrb[26].mxu1  ;;  %v77_v20 = vld [vmem:[%s2930_s2 + $0x20] sm:$0xff] }
 0x5e0   :  { %v1234_v7 = vmul.f32 %v1899_v60, %v2531_v25  ;;  %v1178_v24 = vpop.f32.mrb[27].mxu1  ;;  %v2099_v4 = vpack.c.bf16 %v78_v10, %v77_v20  ;;  %v80_v60 = vld [vmem:[%s2930_s2 + $0x38] sm:$0xff] }
 0x5e1   :  { %v1233_v9 = vmul.f32 %v1178_v24, %v2534_v28  ;;  %2064 = vmatpush3.bf16.msra.mxu0 %v2063_v2  ;;  %v79_v2 = vld [vmem:[%s2930_s2 + $0x30] sm:$0xff]  ;;  %v48_v24 = vld [vmem:[%s2929_s1 + $0x100] sm:$0xff] }
 0x5e2   :  { %2065 = vmatprep.subr.bf16.mxu0 %v2226_v12 }
 0x5e3   :  { %v2066_v33 = vpack.c.bf16 %v1234_v7, %v1233_v9  ;;  %v1902_v39 = vpop.f32.mrb[28].mxu1  ;;  %v2102_v7 = vpack.c.bf16 %v80_v60, %v79_v2  ;;  %v49_v9 = vld [vmem:[%s2929_s1 + $0x108] sm:$0xff] }
 0x5e4   :  { %v1236_v16 = vmul.f32 %v1902_v39, %v2545_v35  ;;  %v1188_v32 = vpop.f32.mrb[29].mxu1  ;;  %v2105_v39 = vpack.c.bf16 %v49_v9, %v48_v24 }
 0x5e5   :  { %v1235_v17 = vmul.f32 %v1188_v32, %v2548_v36  ;;  %2067 = vmatpush3.bf16.msra.mxu0 %v2066_v33  ;;  %v50_v33 = vld [vmem:[%s2929_s1 + $0x110] sm:$0xff] }
 0x5e6   :  { %2068 = vmatprep.subr.bf16.mxu0 %v2226_v12 }
 0x5e7   :  { %v2069_v37 = vpack.c.bf16 %v1236_v16, %v1235_v17  ;;  %v1905_v62 = vpop.f32.mrb[30].mxu1  ;;  %v51_v16 = vld [vmem:[%s2929_s1 + $0x118] sm:$0xff]  ;;  %v52_v17 = vld [vmem:[%s2929_s1 + $0x120] sm:$0xff] }
 0x5e8   :  { %v1238_v25 = vmul.f32 %v1905_v62, %v2559_v42  ;;  %v1198_v30 = vpop.f32.mrb[31].mxu1  ;;  %v2108_v32 = vpack.c.bf16 %v51_v16, %v50_v33 }
 0x5e9   :  { %v1237_v28 = vmul.f32 %v1198_v30, %v2562_v44  ;;  %2070 = vmatpush3.bf16.msra.mxu0 %v2069_v37  ;;  %v53_v37 = vld [vmem:[%s2929_s1 + $0x128] sm:$0xff]  ;;  %v55_v30 = vld [vmem:[%s2929_s1 + $0x138] sm:$0xff] }
 0x5ea   :  { %2071 = vmatprep.subr.bf16.mxu0 %v2226_v12  ;;  %v2111_v62 = vpack.c.bf16 %v53_v37, %v52_v17 }
 0x5eb   :  { %v2072_v11 = vpack.c.bf16 %v1238_v25, %v1237_v28  ;;  %v1908_v27 = vpop.f32.mrb[32].mxu1  ;;  %v54_v25 = vld [vmem:[%s2929_s1 + $0x130] sm:$0xff] }
 0x5ec   :  { %v1240_v35 = vmul.f32 %v1908_v27, %v2573_v50  ;;  %v1208_v23 = vpop.f32.mrb[33].mxu1  ;;  %v40_v50 = vld [vmem:[%s2929_s1 + $0xc0] sm:$0xff]  ;;  %v2114_v28 = vpack.c.bf16 %v55_v30, %v54_v25  ;;  %v57_v27 = vld [vmem:[%s2929_s1 + $0x148] sm:$0xff] }
 0x5ed   :  { %v1239_v36 = vmul.f32 %v1208_v23, %v2576_v51  ;;  %2073 = vmatpush3.bf16.msra.mxu0 %v2072_v11  ;;  %v41_v51 = vld [vmem:[%s2929_s1 + $0xc8] sm:$0xff]  ;;  %v56_v11 = vld [vmem:[%s2929_s1 + $0x140] sm:$0xff]  ;;  %v58_v23 = vld [vmem:[%s2929_s1 + $0x150] sm:$0xff] }
 0x5ee   :  { %2074 = vmatprep.subr.bf16.mxu0 %v2226_v12 }
 0x5ef   :  { %v2075_v49 = vpack.c.bf16 %v1240_v35, %v1239_v36  ;;  %v1911_v40 = vpop.f32.mrb[34].mxu1  ;;  %v2117_v35 = vpack.c.bf16 %v57_v27, %v56_v11  ;;  %v59_v36 = vld [vmem:[%s2929_s1 + $0x158] sm:$0xff] }
 0x5f0   :  { %v1242_v42 = vmul.f32 %v1911_v40, %v2585_v54  ;;  %v1218_v34 = vpop.f32.mrb[35].mxu1  ;;  %v2081_v54 = vpack.c.bf16 %v41_v51, %v40_v50  ;;  %v60_v40 = vld [vmem:[%s2929_s1 + $0x160] sm:$0xff] }
 0x5f1   :  { %v1241_v44 = vmul.f32 %v1218_v34, %v2588_v58  ;;  %2076 = vmatpush3.bf16.msra.mxu0 %v2075_v49  ;;  %v43_v58 = vld [vmem:[%s2929_s1 + $0xd8] sm:$0xff]  ;;  %v2120_v49 = vpack.c.bf16 %v59_v36, %v58_v23 }
 0x5f2   :  { %2077 = vmatprep.subr.bf16.mxu0 %v2226_v12  ;;  %v2084_v57 = vpack.c.bf16 %v43_v58, %v42_v56  ;;  %v1643_v56 = vld [vmem:[%s2929_s1 + $0x1c0] ss:$0 sm:$0xff] }
 0x5f3   :  { %v2078_v48 = vpack.c.bf16 %v1242_v42, %v1241_v44  ;;  %v61_v42 = vld [vmem:[%s2929_s1 + $0x168] sm:$0xff] }
 0x5f4   :  { %v2123_v34 = vpack.c.bf16 %v61_v42, %v60_v40 }
 0x5f5   :  { %2079 = vmatpush3.bf16.msra.mxu0 %v2078_v48  ;;  %v1642_v48 = vld [vmem:[%s2929_s1 + $0x1b8] ss:$0 sm:$0xff] }
 0x5f6   :  { %2080 = vmatprep.subr.bf16.mxu0 %v2226_v12 }
 0x5f8   :  { %1945 = vmatmul.mubr.msk.f32.vlgmr.msra.gmra.mrb[18].mxu0 %vm199_vm3, %v2229_v61 }
 0x5f9   :  { %2082 = vmatpush3.bf16.msra.mxu0 %v2081_v54  ;;  %1963 = vmatprep.mubr.msk.f32.mxu0 %vm2227_vm1, %v2228_v19 }
 0x5fa   :  { %2083 = vmatprep.subr.bf16.mxu0 %v2226_v12 }
 0x5fd   :  { %2085 = vmatpush3.bf16.msra.mxu0 %v2084_v57  ;;  %v63_v57 = vld [vmem:[%s2929_s1 + $0x178] sm:$0xff] }
 0x5fe   :  { %2086 = vmatprep.subr.bf16.mxu0 %v2226_v12 }
 0x601   :  { %2088 = vmatpush3.bf16.msra.mxu0 %v2087_v43 }
 0x602   :  { %2089 = vmatprep.subr.bf16.mxu0 %v2226_v12 }
 0x605   :  { %2091 = vmatpush3.bf16.msra.mxu0 %v2090_v22 }
 0x606   :  { %2104 = vmatprep.subr.bf16.mxu0 %v2226_v12 }
 0x6cb   :  { %v1309_v3 = vpop.f32.mrb[18].mxu0 }
 0x6cc   :  { %1964 = vmatmul.mubr.msk.f32.vlgmr.msra.gmra.mrb[20].mxu0 %vm201_vm0, %v1309_v3  ;;  %v1946_v21 = vpop.f32.mrb[19].mxu0  ;;  %v1646_v3 = vld [vmem:[%s2929_s1 + $0x1a0] ss:$0 sm:$0xff] }
 0x6cd   :  { %2017 = vmatprep.mubr.msk.f32.mxu0 %vm2227_vm1, %v2228_v19  ;;  %v73_v19 = vld [vmem:[%s2930_s2] sm:$0xff]  ;;  %2106 = vmatpush3.bf16.msra.mxu0 %v2105_v39  ;;  %s2202_s2 = scalar_lea.vmem %s1575_s12, 128 }
 0x6ce   :  { %v2093_v8 = vpack.c.bf16 %v74_v18, %v73_v19  ;;  %2107 = vmatprep.subr.bf16.mxu0 %v2226_v12  ;;  %p2203_p0 = scmp.ne.s32.totalorder %s1575_s12, %s2202_s2  ;;  %p2208_p2 = scmp.lt.s32.totalorder %s2202_s2, %s2202_s2 }
 0x6d0   :  { %2094 = vmatpush3.bf16.msra.mxu1 %v2093_v8  ;;  %p2209_p3 = por %p2208_p2, %p2207_p1 }
 0x6d1   :  { %2095 = vmatprep.subr.bf16.mxu1 %v2226_v12  ;;  %2109 = vmatpush3.bf16.msra.mxu0 %v2108_v32 }
 0x6d2   :  { %2110 = vmatprep.subr.bf16.mxu0 %v2226_v12  ;;  %p2210_p4 = pnand %p2209_p3, %p2203_p0 }
 0x6d4   :  { %2097 = vmatpush3.bf16.msra.mxu1 %v2096_v5 }
 0x6d5   :  { %2098 = vmatprep.subr.bf16.mxu1 %v2226_v12  ;;  %2112 = vmatpush3.bf16.msra.mxu0 %v2111_v62 }
 0x6d6   :  { %2113 = vmatprep.subr.bf16.mxu0 %v2226_v12 }
 0x6d8   :  { %2100 = vmatpush3.bf16.msra.mxu1 %v2099_v4 }
 0x6d9   :  { %2101 = vmatprep.subr.bf16.mxu1 %v2226_v12  ;;  %2115 = vmatpush3.bf16.msra.mxu0 %v2114_v28 }
 0x6da   :  { %2116 = vmatprep.subr.bf16.mxu0 %v2226_v12 }
 0x6dc   :  { %2103 = vmatpush3.bf16.msra.mxu1 %v2102_v7 }
 0x6dd   :  { %2118 = vmatpush3.bf16.msra.mxu0 %v2117_v35 }
 0x6de   :  { %2119 = vmatprep.subr.bf16.mxu0 %v2226_v12 }
 0x6e1   :  { %2121 = vmatpush3.bf16.msra.mxu0 %v2120_v49 }
 0x6e2   :  { %2122 = vmatprep.subr.bf16.mxu0 %v2226_v12 }
 0x6e5   :  { %2124 = vmatpush3.bf16.msra.mxu0 %v2123_v34 }
 0x6e6   :  { %2125 = vmatprep.subr.bf16.mxu0 %v2226_v12  ;;  %v62_v12 = vld [vmem:[%s2929_s1 + $0x170] sm:$0xff] }
 0x6e7   :  { %v2126_v55 = vpack.c.bf16 %v63_v57, %v62_v12 }
 0x6e9   :  { %2127 = vmatpush3.bf16.msra.mxu0 %v2126_v55 }
 0x79f   :  { %v1386_v0 = vpop.f32.mrb[20].mxu0 }
 0x7a0   :  { %v1387_v26 = vadd.f32 %v1640_v53, %v1386_v0  ;;  %v1965_v63 = vpop.f32.mrb[21].mxu0 }
 0x7a2   :  { %v2813_v59 = vadd.f32 %v2201_v1, %v1387_v26 }
 0x7a4   :  { %v1391_v38 = vsel %vm201_vm0, %v2813_v59, 0.0 }
 0x7a5   :  { %1392 = vadd.xlane.f32.xlu0 %v1391_v38 }
 0x832   :  { %v1393_v41 = vpop.xlane.xlu0 %1392 }
 0x833   :  { %v1394_v6 = vmul.f32 0.015625, %v1393_v41 }
 0x835   :  { %v1395_v45 = vsub.f32 %v2813_v59, %v1394_v6 }
 0x837   :  { %v1396_v29 = vmul.f32 %v1395_v45, %v1395_v45 }
 0x839   :  { %v1397_v31 = vsel %vm201_vm0, %v1396_v29, 0.0 }
 0x83a   :  { %1398 = vadd.xlane.f32.xlu1 %v1397_v31 }
 0x8c7   :  { %v1399_v44 = vpop.xlane.xlu1 %1398 }
 0x8c8   :  { %v1400_v15 = vmul.f32 0.015625, %v1399_v44 }
 0x8ca   :  { %v1401_v50 = vadd.f32 1e-05, %v1400_v15 }
 0x8cc   :  { %2199 = vrsqrt.f32 %v1401_v50 }
 0x8d6   :  { %v2200_v51 = vpop.eup %2199 }
 0x8d7   :  { %v1403_v54 = vmul.f32 %v2200_v51, %v1395_v45 }
 0x8d9   :  { %v1408_v58 = vmul.f32 %v1642_v48, %v1403_v54 }
 0x8db   :  { %v1413_v61 = vadd.f32 %v1643_v56, %v1408_v58 }
 0x8dd   :  { %1983 = vmatmul.mubr.msk.f32.vlgmr.msra.gmra.mrb[36].mxu1 %vm201_vm0, %v1413_v61 }
 0x9b0   :  { %v1487_v43 = vpop.f32.mrb[36].mxu1 }
 0x9b1   :  { %v1488_v52 = vadd.f32 %v1644_v47, %v1487_v43  ;;  %v1984_v14 = vpop.f32.mrb[37].mxu1 }
 0x9b3   :  { %v1491_v22 = vmax.f32 %v1488_v52, 0.0 }
 0x9b5   :  { %2018 = vmatmul.mubr.f32.vlgmr.msra.gmra.mrb[22].mxu0 %v1491_v22 }
 0xa88   :  { %v1562_v21 = vpop.f32.mrb[22].mxu0 }
 0xa89   :  { %v1563_v53 = vadd.f32 %v1646_v3, %v1562_v21  ;;  %v2019_v0 = vpop.f32.mrb[23].mxu0 }
 0xa8b   :  { %v1566_v26 = vadd.f32 %v1563_v53, %v2813_v59 }
 0xa8d   :  { %1567 = vst.msk [vmem:[#allocation2] sm:$0xff] %vm201_vm0, %v1566_v26 }
 0xa8e   :  { %2213 = shalt.err (!%p2210_p4)
}
 0xa8f   :  { %s2214_s1 = scalar_lea.hbm %s2931_s3, 128 }
 0xa90   :  { %p2215_p5 = scmp.ne.s32.totalorder %s2931_s3, %s2214_s1  ;;  %p2218_p6 = scmp.lt.u32.totalorder %s2214_s1, %s2931_s3 }
 0xa92   :  { %p2220_p7 = pnand %p2218_p6, %p2215_p5 }
 0xa94   :  { %2223 = shalt.err (!%p2220_p7)
}
 0xa95   :  { %1577 = dma.vmem_to_hbm [thread:$0]  %s1575_s12, 128, %s2931_s3, [#allocation3]  }
 0xa96   :  { %2224 = dma.done.wait [#allocation3], 128  }
 0xa97   :  { %2225 = vsyncadd [#allocation3], 4294967168 }
 0xa98   :  { %1581 = vsyncpa [#allocation3], 1 }

</bundles_post_ra>
